<compile_context>
chip_gen: v7x
topology: tpu7x:2x2x1
jax: 0.10.0
libtpu: 0.0.40
codegen_flags: <defaults>
</compile_context>

<pallas_src>
import functools

import jax
import jax.numpy as jnp
from jax import lax
from jax.experimental import pallas as pl
from jax.experimental.pallas import tpu as pltpu

BN_EPS = 1e-5
TILE_B = 8192                      # batch tile for the large-batch fallback
FUSED_VMEM_BUDGET = 20 * 1024 * 1024   # rough live-bytes budget for fused path
VMEM_LIMIT = 32 * 1024 * 1024      # v7x-safe scoped VMEM limit


def _round_up(n, m):
    return ((n + m - 1) // m) * m


# ==========================================================================
# Fused path: whole batch resident in VMEM, one pallas_call.
# ==========================================================================
def _fused_kernel(x_ref, w1_ref, b1_ref, g1_ref, be1_ref,
                  w2_ref, b2_ref, g2_ref, be2_ref,
                  w3_ref, b3_ref, o_ref):
    def bn_relu(h, g, b):
        # Training-mode BN: batch mean, biased variance (centered -> stable).
        mean = jnp.mean(h, axis=0, keepdims=True)
        c = h - mean
        var = jnp.mean(c * c, axis=0, keepdims=True)
        inv = lax.rsqrt(var + BN_EPS)
        return jnp.maximum(c * (g * inv) + b, 0.0)

    h1 = jnp.dot(x_ref[...], w1_ref[...],
                 preferred_element_type=jnp.float32) + b1_ref[...]
    a1 = bn_relu(h1, g1_ref[...], be1_ref[...])
    h2 = jnp.dot(a1, w2_ref[...],
                 preferred_element_type=jnp.float32) + b2_ref[...]
    a2 = bn_relu(h2, g2_ref[...], be2_ref[...])
    o_ref[...] = (jnp.dot(a2, w3_ref[...],
                          preferred_element_type=jnp.float32) + b3_ref[...])


def _forward_fused(x, p):
    B, _ = x.shape
    f32 = jnp.float32
    out_dim = p["w3"].shape[1]
    return pl.pallas_call(
        _fused_kernel,
        out_shape=jax.ShapeDtypeStruct((B, out_dim), f32),
        compiler_params=pltpu.CompilerParams(vmem_limit_bytes=VMEM_LIMIT),
    )(x.astype(f32),
      p["w1"].astype(f32), p["b1"].astype(f32),
      p["g1"].astype(f32), p["be1"].astype(f32),
      p["w2"].astype(f32), p["b2"].astype(f32),
      p["g2"].astype(f32), p["be2"].astype(f32),
      p["w3"].astype(f32), p["b3"].astype(f32))


# ==========================================================================
# Tiled fallback (batches too large for the fused path).
# ==========================================================================
def _l1_kernel(x_ref, w1_ref, h1_ref, s_ref, ss_ref):
    # h1 = x @ W1 (b1 dropped: cancelled exactly by BN mean subtraction).
    h = jnp.dot(x_ref[...], w1_ref[...], preferred_element_type=jnp.float32)
    h1_ref[...] = h
    # per-tile sum / sum-of-squares (padded batch rows are exactly zero)
    s_ref[...] = jnp.sum(h, axis=0, keepdims=True)[None]
    ss_ref[...] = jnp.sum(h * h, axis=0, keepdims=True)[None]


def _l2_kernel(h1_ref, sc1_ref, sh1_ref, w2_ref, h2_ref, s_ref, ss_ref,
               *, tile_b, n_valid, need_mask):
    # bn1 (precomputed scale/shift) + relu
    a = jnp.maximum(h1_ref[...] * sc1_ref[...] + sh1_ref[...], 0.0)
    if need_mask:
        # zero padded batch rows so layer-2 statistics stay exact
        hid = a.shape[1]
        row = (pl.program_id(0) * tile_b
               + lax.broadcasted_iota(jnp.int32, (tile_b, hid), 0))
        a = jnp.where(row < n_valid, a, 0.0)
    h2 = jnp.dot(a, w2_ref[...], preferred_element_type=jnp.float32)
    h2_ref[...] = h2
    s_ref[...] = jnp.sum(h2, axis=0, keepdims=True)[None]
    ss_ref[...] = jnp.sum(h2 * h2, axis=0, keepdims=True)[None]


def _l3_kernel(h2_ref, sc2_ref, sh2_ref, w3_ref, b3_ref, o_ref):
    a = jnp.maximum(h2_ref[...] * sc2_ref[...] + sh2_ref[...], 0.0)
    o_ref[...] = (jnp.dot(a, w3_ref[...], preferred_element_type=jnp.float32)
                  + b3_ref[...])


def _scale_shift(sums, sumsqs, gamma, beta, n):
    """Finish BN stats from per-tile partials (tiny (1, hid) math)."""
    s = jnp.sum(sums, axis=0)        # (1, hid)
    ss = jnp.sum(sumsqs, axis=0)     # (1, hid)
    mean = s / n
    var = jnp.maximum(ss / n - mean * mean, 0.0)
    inv = lax.rsqrt(var + BN_EPS)
    scale = gamma * inv
    shift = beta - mean * scale
    return scale, shift


def _forward_tiled(x, p, tile_b=TILE_B):
    B, in_dim = x.shape
    f32 = jnp.float32
    hid = p["w1"].shape[1]
    out_dim = p["w3"].shape[1]

    x = x.astype(f32)
    b_pad = _round_up(max(B, 1), tile_b)
    n_tiles = b_pad // tile_b
    if b_pad != B:
        x = jnp.pad(x, ((0, b_pad - B), (0, 0)))

    w1 = p["w1"].astype(f32)
    w2 = p["w2"].astype(f32)
    w3 = p["w3"].astype(f32)
    b3 = p["b3"].astype(f32)
    g1, be1 = p["g1"].astype(f32), p["be1"].astype(f32)
    g2, be2 = p["g2"].astype(f32), p["be2"].astype(f32)
    # b1 / b2 intentionally unused here: a Linear bias right before
    # training-mode BatchNorm is cancelled exactly by the mean subtraction.

    cparams = pltpu.CompilerParams(
        dimension_semantics=("parallel",),
        vmem_limit_bytes=VMEM_LIMIT,
    )

    act_spec = pl.BlockSpec((tile_b, hid), lambda i: (i, 0))
    vec_spec = pl.BlockSpec((1, hid), lambda i: (0, 0))
    stat_spec = pl.BlockSpec((1, 1, hid), lambda i: (i, 0, 0))
    stat_shape = jax.ShapeDtypeStruct((n_tiles, 1, hid), f32)
    act_shape = jax.ShapeDtypeStruct((b_pad, hid), f32)

    # ---- pass 1: h1 = x @ W1, per-tile sum / sumsq -----------------------
    h1, s1, ss1 = pl.pallas_call(
        _l1_kernel,
        grid=(n_tiles,),
        in_specs=[pl.BlockSpec((tile_b, in_dim), lambda i: (i, 0)),
                  pl.BlockSpec((in_dim, hid), lambda i: (0, 0))],
        out_specs=[act_spec, stat_spec, stat_spec],
        out_shape=[act_shape, stat_shape, stat_shape],
        compiler_params=cparams,
    )(x, w1)
    scale1, shift1 = _scale_shift(s1, ss1, g1, be1, B)

    # ---- pass 2: a1 = relu(bn1(h1)); h2 = a1 @ W2, per-tile stats --------
    k2 = functools.partial(_l2_kernel, tile_b=tile_b, n_valid=B,
                           need_mask=(b_pad != B))
    h2, s2, ss2 = pl.pallas_call(
        k2,
        grid=(n_tiles,),
        in_specs=[act_spec, vec_spec, vec_spec,
                  pl.BlockSpec((hid, hid), lambda i: (0, 0))],
        out_specs=[act_spec, stat_spec, stat_spec],
        out_shape=[act_shape, stat_shape, stat_shape],
        compiler_params=cparams,
    )(h1, scale1, shift1, w2)
    scale2, shift2 = _scale_shift(s2, ss2, g2, be2, B)

    # ---- pass 3: out = relu(bn2(h2)) @ W3 + b3 (logical-width store) -----
    out = pl.pallas_call(
        _l3_kernel,
        grid=(n_tiles,),
        in_specs=[act_spec, vec_spec, vec_spec,
                  pl.BlockSpec((hid, out_dim), lambda i: (0, 0)),
                  pl.BlockSpec((1, out_dim), lambda i: (0, 0))],
        out_specs=pl.BlockSpec((tile_b, out_dim), lambda i: (i, 0)),
        out_shape=jax.ShapeDtypeStruct((b_pad, out_dim), f32),
        compiler_params=cparams,
    )(h2, scale2, shift2, w3, b3)

    return out[:B]


# ==========================================================================
# Public entry point
# ==========================================================================
def neural_network_model(x, params):
    """x: (B, input_dim) float32. params: dict of weights (see init_params)."""
    B, in_dim = x.shape
    hid = params["w1"].shape[1]
    # Rough live-bytes estimate of the fused (VMEM-resident) path.
    fused_bytes = B * (in_dim + 4 * hid) * 4
    if fused_bytes <= FUSED_VMEM_BUDGET:
        return _forward_fused(x, params)
    return _forward_tiled(x, params, tile_b=TILE_B)


# ==========================================================================
# Params / reference
# ==========================================================================
def init_params(key, input_dim, hidden=64, out_dim=3):
    """Deterministic init mimicking PyTorch defaults (uniform +/- 1/sqrt(fan_in))."""
    ks = jax.random.split(key, 6)

    def linear(kw, kb, fan_in, fan_out):
        bound = 1.0 / jnp.sqrt(float(fan_in))
        w = jax.random.uniform(kw, (fan_in, fan_out), jnp.float32, -bound, bound)
        b = jax.random.uniform(kb, (1, fan_out), jnp.float32, -bound, bound)
        return w, b

    w1, b1 = linear(ks[0], ks[1], input_dim, hidden)
    w2, b2 = linear(ks[2], ks[3], hidden, hidden)
    w3, b3 = linear(ks[4], ks[5], hidden, out_dim)
    return {
        "w1": w1, "b1": b1,
        "g1": jnp.ones((1, hidden), jnp.float32),
        "be1": jnp.zeros((1, hidden), jnp.float32),
        "w2": w2, "b2": b2,
        "g2": jnp.ones((1, hidden), jnp.float32),
        "be2": jnp.zeros((1, hidden), jnp.float32),
        "w3": w3, "b3": b3,
    }


def reference_forward(x, p):
    """Pure-JAX reference with full PyTorch semantics (biases + two-pass BN)."""
    def bn_relu(h, g, b):
        m = jnp.mean(h, axis=0, keepdims=True)
        v = jnp.mean((h - m) ** 2, axis=0, keepdims=True)
        return jnp.maximum((h - m) / jnp.sqrt(v + BN_EPS) * g + b, 0.0)

    h = bn_relu(x @ p["w1"] + p["b1"], p["g1"], p["be1"])
    h = bn_relu(h @ p["w2"] + p["b2"], p["g2"], p["be2"])
    return h @ p["w3"] + p["b3"]


if __name__ == "__main__":
    key = jax.random.PRNGKey(0)
    k_x, k_p, k_x2 = jax.random.split(key, 3)

    batch, input_dim = 8, 32
    x = jax.random.normal(k_x, (batch, input_dim), jnp.float32)
    params = init_params(k_p, input_dim)

    # fused (VMEM-resident) path
    fwd = jax.jit(neural_network_model)
    out = jax.block_until_ready(fwd(x, params))
    ref = reference_forward(x, params)
    assert out.shape == (batch, 3)
    assert jnp.allclose(out, ref, atol=1e-4, rtol=1e-4)

    # also exercise the large-batch tiled fallback at tiny shapes
    # (multi-tile BN stat reduction + padded-row masking)
    x2 = jax.random.normal(k_x2, (20, input_dim), jnp.float32)
    tiled = jax.jit(functools.partial(_forward_tiled, tile_b=8))
    out2 = jax.block_until_ready(tiled(x2, params))
    ref2 = reference_forward(x2, params)
    assert out2.shape == (20, 3)
    assert jnp.allclose(out2, ref2, atol=1e-4, rtol=1e-4)

    print("KERNEL_OK")
</pallas_src>

<mosaic_0001>
module attributes {stable_mosaic.version = 11 : i64} {
  func.func @_fused_kernel(%arg0: memref<8x32xf32, #tpu.memory_space<vmem>>, %arg1: memref<32x64xf32, #tpu.memory_space<vmem>>, %arg2: memref<1x64xf32, #tpu.memory_space<vmem>>, %arg3: memref<1x64xf32, #tpu.memory_space<vmem>>, %arg4: memref<1x64xf32, #tpu.memory_space<vmem>>, %arg5: memref<64x64xf32, #tpu.memory_space<vmem>>, %arg6: memref<1x64xf32, #tpu.memory_space<vmem>>, %arg7: memref<1x64xf32, #tpu.memory_space<vmem>>, %arg8: memref<1x64xf32, #tpu.memory_space<vmem>>, %arg9: memref<64x3xf32, #tpu.memory_space<vmem>>, %arg10: memref<1x3xf32, #tpu.memory_space<vmem>>, %arg11: memref<8x3xf32, #tpu.memory_space<vmem>>) attributes {dimension_semantics = [], scalar_prefetch = 0 : i64, scratch_operands = 0 : i64, tpu.core_type = #tpu.core_type<tc>} {
    %c0 = arith.constant 0 : index
    %c0_0 = arith.constant 0 : index
    %0 = vector.load %arg0[%c0, %c0_0] : memref<8x32xf32, #tpu.memory_space<vmem>>, vector<8x32xf32>
    %c0_1 = arith.constant 0 : index
    %c0_2 = arith.constant 0 : index
    %1 = vector.load %arg1[%c0_1, %c0_2] : memref<32x64xf32, #tpu.memory_space<vmem>>, vector<32x64xf32>
    %cst = arith.constant dense<0.000000e+00> : vector<8x64xf32>
    %2 = tpu.matmul %0, %1, %cst {dimension_numbers = #tpu.dot_dimension_numbers<[1], [0], [0], [1], [0, 0, 1, 1], [], []>} : vector<8x32xf32>, vector<32x64xf32>, vector<8x64xf32> -> vector<8x64xf32>
    %c0_3 = arith.constant 0 : index
    %c0_4 = arith.constant 0 : index
    %3 = vector.load %arg2[%c0_3, %c0_4] : memref<1x64xf32, #tpu.memory_space<vmem>>, vector<1x64xf32>
    %4 = vector.broadcast %3 : vector<1x64xf32> to vector<8x64xf32>
    %5 = arith.addf %2, %4 : vector<8x64xf32>
    %c0_5 = arith.constant 0 : index
    %c0_6 = arith.constant 0 : index
    %6 = vector.load %arg3[%c0_5, %c0_6] : memref<1x64xf32, #tpu.memory_space<vmem>>, vector<1x64xf32>
    %c0_7 = arith.constant 0 : index
    %c0_8 = arith.constant 0 : index
    %7 = vector.load %arg4[%c0_7, %c0_8] : memref<1x64xf32, #tpu.memory_space<vmem>>, vector<1x64xf32>
    %cst_9 = arith.constant dense<0.000000e+00> : vector<64xf32>
    %8 = vector.multi_reduction <add>, %5, %cst_9 [0] : vector<8x64xf32> to vector<64xf32>
    %9 = vector.shape_cast %8 : vector<64xf32> to vector<1x64xf32>
    %cst_10 = arith.constant 8.000000e+00 : f32
    %10 = vector.broadcast %cst_10 : f32 to vector<1x64xf32>
    %11 = arith.divf %9, %10 : vector<1x64xf32>
    %12 = vector.broadcast %11 : vector<1x64xf32> to vector<8x64xf32>
    %13 = arith.subf %5, %12 : vector<8x64xf32>
    %14 = arith.mulf %13, %13 : vector<8x64xf32>
    %cst_11 = arith.constant dense<0.000000e+00> : vector<64xf32>
    %15 = vector.multi_reduction <add>, %14, %cst_11 [0] : vector<8x64xf32> to vector<64xf32>
    %16 = vector.shape_cast %15 : vector<64xf32> to vector<1x64xf32>
    %cst_12 = arith.constant 8.000000e+00 : f32
    %17 = vector.broadcast %cst_12 : f32 to vector<1x64xf32>
    %18 = arith.divf %16, %17 : vector<1x64xf32>
    %cst_13 = arith.constant 9.99999974E-6 : f32
    %19 = vector.broadcast %cst_13 : f32 to vector<1x64xf32>
    %20 = arith.addf %18, %19 : vector<1x64xf32>
    %21 = math.rsqrt %20 : vector<1x64xf32>
    %22 = arith.mulf %6, %21 : vector<1x64xf32>
    %23 = vector.broadcast %22 : vector<1x64xf32> to vector<8x64xf32>
    %24 = arith.mulf %13, %23 : vector<8x64xf32>
    %25 = vector.broadcast %7 : vector<1x64xf32> to vector<8x64xf32>
    %26 = arith.addf %24, %25 : vector<8x64xf32>
    %cst_14 = arith.constant 0.000000e+00 : f32
    %27 = vector.broadcast %cst_14 : f32 to vector<8x64xf32>
    %28 = arith.maximumf %26, %27 : vector<8x64xf32>
    %c0_15 = arith.constant 0 : index
    %c0_16 = arith.constant 0 : index
    %29 = vector.load %arg5[%c0_15, %c0_16] : memref<64x64xf32, #tpu.memory_space<vmem>>, vector<64x64xf32>
    %cst_17 = arith.constant dense<0.000000e+00> : vector<8x64xf32>
    %30 = tpu.matmul %28, %29, %cst_17 {dimension_numbers = #tpu.dot_dimension_numbers<[1], [0], [0], [1], [0, 0, 1, 1], [], []>} : vector<8x64xf32>, vector<64x64xf32>, vector<8x64xf32> -> vector<8x64xf32>
    %c0_18 = arith.constant 0 : index
    %c0_19 = arith.constant 0 : index
    %31 = vector.load %arg6[%c0_18, %c0_19] : memref<1x64xf32, #tpu.memory_space<vmem>>, vector<1x64xf32>
    %32 = vector.broadcast %31 : vector<1x64xf32> to vector<8x64xf32>
    %33 = arith.addf %30, %32 : vector<8x64xf32>
    %c0_20 = arith.constant 0 : index
    %c0_21 = arith.constant 0 : index
    %34 = vector.load %arg7[%c0_20, %c0_21] : memref<1x64xf32, #tpu.memory_space<vmem>>, vector<1x64xf32>
    %c0_22 = arith.constant 0 : index
    %c0_23 = arith.constant 0 : index
    %35 = vector.load %arg8[%c0_22, %c0_23] : memref<1x64xf32, #tpu.memory_space<vmem>>, vector<1x64xf32>
    %cst_24 = arith.constant dense<0.000000e+00> : vector<64xf32>
    %36 = vector.multi_reduction <add>, %33, %cst_24 [0] : vector<8x64xf32> to vector<64xf32>
    %37 = vector.shape_cast %36 : vector<64xf32> to vector<1x64xf32>
    %cst_25 = arith.constant 8.000000e+00 : f32
    %38 = vector.broadcast %cst_25 : f32 to vector<1x64xf32>
    %39 = arith.divf %37, %38 : vector<1x64xf32>
    %40 = vector.broadcast %39 : vector<1x64xf32> to vector<8x64xf32>
    %41 = arith.subf %33, %40 : vector<8x64xf32>
    %42 = arith.mulf %41, %41 : vector<8x64xf32>
    %cst_26 = arith.constant dense<0.000000e+00> : vector<64xf32>
    %43 = vector.multi_reduction <add>, %42, %cst_26 [0] : vector<8x64xf32> to vector<64xf32>
    %44 = vector.shape_cast %43 : vector<64xf32> to vector<1x64xf32>
    %cst_27 = arith.constant 8.000000e+00 : f32
    %45 = vector.broadcast %cst_27 : f32 to vector<1x64xf32>
    %46 = arith.divf %44, %45 : vector<1x64xf32>
    %cst_28 = arith.constant 9.99999974E-6 : f32
    %47 = vector.broadcast %cst_28 : f32 to vector<1x64xf32>
    %48 = arith.addf %46, %47 : vector<1x64xf32>
    %49 = math.rsqrt %48 : vector<1x64xf32>
    %50 = arith.mulf %34, %49 : vector<1x64xf32>
    %51 = vector.broadcast %50 : vector<1x64xf32> to vector<8x64xf32>
    %52 = arith.mulf %41, %51 : vector<8x64xf32>
    %53 = vector.broadcast %35 : vector<1x64xf32> to vector<8x64xf32>
    %54 = arith.addf %52, %53 : vector<8x64xf32>
    %cst_29 = arith.constant 0.000000e+00 : f32
    %55 = vector.broadcast %cst_29 : f32 to vector<8x64xf32>
    %56 = arith.maximumf %54, %55 : vector<8x64xf32>
    %c0_30 = arith.constant 0 : index
    %c0_31 = arith.constant 0 : index
    %57 = vector.load %arg9[%c0_30, %c0_31] : memref<64x3xf32, #tpu.memory_space<vmem>>, vector<64x3xf32>
    %cst_32 = arith.constant dense<0.000000e+00> : vector<8x3xf32>
    %58 = tpu.matmul %56, %57, %cst_32 {dimension_numbers = #tpu.dot_dimension_numbers<[1], [0], [0], [1], [0, 0, 1, 1], [], []>} : vector<8x64xf32>, vector<64x3xf32>, vector<8x3xf32> -> vector<8x3xf32>
    %c0_33 = arith.constant 0 : index
    %c0_34 = arith.constant 0 : index
    %59 = vector.load %arg10[%c0_33, %c0_34] : memref<1x3xf32, #tpu.memory_space<vmem>>, vector<1x3xf32>
    %60 = vector.broadcast %59 : vector<1x3xf32> to vector<8x3xf32>
    %61 = arith.addf %58, %60 : vector<8x3xf32>
    %c0_35 = arith.constant 0 : index
    %c0_36 = arith.constant 0 : index
    %62 = vector.load %arg11[%c0_35, %c0_36] : memref<8x3xf32, #tpu.memory_space<vmem>>, vector<8x3xf32>
    tpu.vector_store %arg11[%c0_35, %c0_36], %61 {strides = array<i32>} : memref<8x3xf32, #tpu.memory_space<vmem>>, vector<8x3xf32>,
    return
  }
}

</mosaic_0001>

<bundles_post_ra>
// kernel: neural_network_model.1
= control target key start
LH: loop header
LB: loop body
LE: loop exit
PB: predicated region body
PF: predicated region fallthrough
CT: control target
= control target key end

     0   :  { %16 = vsyncpa [#allocation3], 0  ;;  %s810_s0 = inlined_call_operand.hbm [shape: f32[8,32], index: 0, kind: input, shape index: {}]   ;;  %s811_s1 = inlined_call_operand.vmem [shape: f32[32,64], index: 1, kind: input, shape index: {}]   ;;  %s812_s2 = inlined_call_operand.vmem [shape: f32[1,64], index: 2, kind: input, shape index: {}]   ;;  %s813_s3 = inlined_call_operand.vmem [shape: f32[1,64], index: 3, kind: input, shape index: {}]   ;;  %s814_s4 = inlined_call_operand.vmem [shape: f32[1,64], index: 4, kind: input, shape index: {}]   ;;  %s815_s5 = inlined_call_operand.vmem [shape: f32[64,64], index: 5, kind: input, shape index: {}]   ;;  %s816_s6 = inlined_call_operand.vmem [shape: f32[1,64], index: 6, kind: input, shape index: {}]   ;;  %s817_s7 = inlined_call_operand.vmem [shape: f32[1,64], index: 7, kind: input, shape index: {}]   ;;  %s818_s8 = inlined_call_operand.hbm [shape: f32[1,64], index: 8, kind: input, shape index: {}]   ;;  %s819_s9 = inlined_call_operand.vmem [shape: f32[64,3], index: 9, kind: input, shape index: {}]   ;;  %s820_s10 = inlined_call_operand.hbm [shape: f32[1,3], index: 10, kind: input, shape index: {}]   ;;  %s821_s11 = inlined_call_operand.vmem [shape: f32[8,3], index: 11, kind: output, shape index: {}]  }
   0x1   :  { %17 = vsyncpa [#allocation5], 0  ;;  %s611_s17 = smov [#allocation4]   ;;  %s612_s19 = smov [#allocation2]  }
   0x2   :  { %s48_s18 = sshll.u32 %s611_s17, 4  ;;  %s24_s20 = sshll.u32 %s612_s19, 4  ;;  %s49_s18 = int_to_ptr.vmem [resolvable:$true] %s48_s18  ;;  %s25_s20 = int_to_ptr.vmem [resolvable:$true] %s24_s20 }
   0x3   :  { %s541_s23 = scalar_lea.hbm %s818_s8, 16 }
   0x4   :  { %p542_p0 = scmp.ne.s32.totalorder %s818_s8, %s541_s23  ;;  %p545_p1 = scmp.lt.u32.totalorder %s541_s23, %s818_s8 }
   0x6   :  { %p547_p2 = pnand %p545_p1, %p542_p0 }
   0x8   :  { %550 = shalt.err (!%p547_p2)
}
   0x9   :  { %s551_s28 = scalar_lea.vmem %s49_s18, 16  ;;  %s555_s29 = scalar_lea.vmem %s49_s18, 32 }
   0xa   :  { %p552_p3 = scmp.ne.s32.totalorder %s49_s18, %s551_s28  ;;  %p556_p4 = scmp.lt.s32.totalorder %s49_s18, %s49_s18 }
   0xb   :  { %p557_p5 = scmp.lt.s32.totalorder %s555_s29, %s551_s28 }
   0xd   :  { %p558_p6 = por %p557_p5, %p556_p4 }
   0xf   :  { %p559_p7 = pnand %p558_p6, %p552_p3 }
  0x11   :  { %562 = shalt.err (!%p559_p7)
}
  0x12   :  { %51 = dma.hbm_to_vmem [thread:$0]  %s818_s8, 16, %s49_s18, [#allocation5]  }
  0x13   :  { %s563_s15 = scalar_lea.hbm %s810_s0, 128 }
  0x14   :  { %p564_p8 = scmp.ne.s32.totalorder %s810_s0, %s563_s15  ;;  %p567_p9 = scmp.lt.u32.totalorder %s563_s15, %s810_s0 }
  0x16   :  { %p569_p10 = pnand %p567_p9, %p564_p8 }
  0x18   :  { %572 = shalt.err (!%p569_p10)
}
  0x19   :  { %s573_s22 = scalar_lea.vmem %s25_s20, 128  ;;  %p578_p12 = scmp.lt.s32.totalorder %s25_s20, %s25_s20 }
  0x1a   :  { %p574_p11 = scmp.ne.s32.totalorder %s25_s20, %s573_s22  ;;  %p579_p13 = scmp.lt.s32.totalorder %s573_s22, %s573_s22 }
  0x1c   :  { %p580_p0 = por %p579_p13, %p578_p12 }
  0x1e   :  { %p581_p1 = pnand %p580_p0, %p574_p11 }
  0x20   :  { %584 = shalt.err (!%p581_p1)
}
  0x21   :  { %27 = dma.hbm_to_vmem [thread:$0]  %s810_s0, 128, %s25_s20, [#allocation3]  }
  0x22   :  { %s613_s23 = smov [#allocation6]   ;;  %s585_s27 = scalar_lea.hbm %s820_s10, 16 }
  0x23   :  { %s60_s24 = sshll.u32 %s613_s23, 4  ;;  %p586_p2 = scmp.ne.s32.totalorder %s820_s10, %s585_s27  ;;  %s61_s24 = int_to_ptr.vmem [resolvable:$true] %s60_s24 }
  0x24   :  { %p589_p3 = scmp.lt.u32.totalorder %s585_s27, %s820_s10 }
  0x26   :  { %p591_p4 = pnand %p589_p3, %p586_p2 }
  0x28   :  { %594 = shalt.err (!%p591_p4)
}
  0x29   :  { %s595_s13 = scalar_lea.vmem %s61_s24, 16  ;;  %s599_s0 = scalar_lea.vmem %s61_s24, 32 }
  0x2a   :  { %p596_p5 = scmp.ne.s32.totalorder %s61_s24, %s595_s13  ;;  %p600_p6 = scmp.lt.s32.totalorder %s61_s24, %s61_s24 }
  0x2b   :  { %p601_p7 = scmp.lt.s32.totalorder %s599_s0, %s595_s13 }
  0x2d   :  { %p602_p8 = por %p601_p7, %p600_p6 }
  0x2f   :  { %p603_p9 = pnand %p602_p8, %p596_p5 }
  0x31   :  { %606 = shalt.err (!%p603_p9)
}
  0x32   :  { %63 = dma.hbm_to_vmem [thread:$0]  %s820_s10, 16, %s61_s24, [#allocation5]  }
  0x33   :  { %607 = dma.done.wait [#allocation3], 128  }
  0x34   :  { %608 = vsyncadd [#allocation3], 4294967168 }
  0x35   :  { %609 = dma.done.wait [#allocation5], 32  }
  0x36   :  { %610 = vsyncadd [#allocation5], 4294967264  ;;  %v614_v0 = vmov 0.0|0.0   ;;  %vm615_vm0 = vmmov 0   ;;  %v616_v1 = vmov 0.0   ;;  %v74_v2 = vld [vmem:[%s811_s1] sm:$0xff]  ;;  %v185_v44 = vlaneseq }
  0x37   :  { %501 = vmatprep.subr.bf16.mxu0 %v614_v0  ;;  %460 = vmatprep.mubr.msk.f32.mxu0 %vm615_vm0, %v616_v1  ;;  %v75_v3 = vld [vmem:[%s811_s1 + $0x8] sm:$0xff]  ;;  %v76_v4 = vld [vmem:[%s811_s1 + $0x10] sm:$0xff]  ;;  %v77_v6 = vld [vmem:[%s811_s1 + $0x18] sm:$0xff]  ;;  %vm85_vm1 = vcmask 261120   ;;  %vm161_vm2 = vcmask 523264   ;;  %vm413_vm3 = vcmask 23552  }
  0x38   :  { %507 = vmatprep.subr.bf16.mxu1 %v614_v0  ;;  %479 = vmatprep.mubr.msk.f32.mxu1 %vm615_vm0, %v616_v1  ;;  %v502_v5 = vpack.c.bf16 %v75_v3, %v74_v2  ;;  %v505_v7 = vpack.c.bf16 %v77_v6, %v76_v4  ;;  %v73_v8 = vld [vmem:[#allocation2] sm:$0xff]  ;;  %v200_v10 = vld [vmem:[%s815_s5 + $0x8] sm:$0xff]  ;;  %v201_v12 = vld [vmem:[%s815_s5 + $0x10] sm:$0xff]  ;;  %v186_v45 = vshrl.u32 %v185_v44, 7 }
  0x39   :  { %v199_v9 = vld [vmem:[%s815_s5] sm:$0xff]  ;;  %v202_v13 = vld [vmem:[%s815_s5 + $0x18] sm:$0xff]  ;;  %v204_v16 = vld [vmem:[%s815_s5 + $0x28] sm:$0xff] }
  0x3a   :  { %503 = vmatpush3.bf16.msra.mxu0 %v502_v5  ;;  %v508_v11 = vpack.c.bf16 %v200_v10, %v199_v9  ;;  %v511_v14 = vpack.c.bf16 %v202_v13, %v201_v12  ;;  %v203_v15 = vld [vmem:[%s815_s5 + $0x20] sm:$0xff]  ;;  %v205_v18 = vld [vmem:[%s815_s5 + $0x30] sm:$0xff]  ;;  %v206_v19 = vld [vmem:[%s815_s5 + $0x38] sm:$0xff]  ;;  %v187_v47 = vsub.s32 0, %v186_v45 }
  0x3b   :  { %504 = vmatprep.subr.bf16.mxu0 %v614_v0  ;;  %v514_v17 = vpack.c.bf16 %v204_v16, %v203_v15  ;;  %v517_v20 = vpack.c.bf16 %v206_v19, %v205_v18  ;;  %v421_v21 = vld [vmem:[%s812_s2] ss:$0 sm:$0xff]  ;;  %v326_v56 = vld [vmem:[%s819_s9 + $0x8] sm:$0xff]  ;;  %v327_v58 = vld [vmem:[%s819_s9 + $0x10] sm:$0xff] }
  0x3c   :  { %509 = vmatpush3.bf16.msra.mxu1 %v508_v11  ;;  %v159_v46 = vld [vmem:[%s813_s3] sm:$0x1]  ;;  %v328_v59 = vld [vmem:[%s819_s9 + $0x18] sm:$0xff]  ;;  %v330_v62 = vld [vmem:[%s819_s9 + $0x28] sm:$0xff] }
  0x3d   :  { %510 = vmatprep.subr.bf16.mxu1 %v614_v0  ;;  %v423_v51 = vld [vmem:[%s814_s4] ss:$0 sm:$0xff]  ;;  %v523_v60 = vpack.c.bf16 %v328_v59, %v327_v58  ;;  %v332_v2 = vld [vmem:[%s819_s9 + $0x38] sm:$0xff] }
  0x3e   :  { %506 = vmatpush3.bf16.msra.mxu0 %v505_v7  ;;  %v325_v55 = vld [vmem:[%s819_s9] sm:$0xff] }
  0x3f   :  { %519 = vmatprep.subr.bf16.mxu0 %v614_v0  ;;  %v520_v57 = vpack.c.bf16 %v326_v56, %v325_v55  ;;  %v329_v61 = vld [vmem:[%s819_s9 + $0x20] sm:$0xff] }
  0x40   :  { %512 = vmatpush3.bf16.msra.mxu1 %v511_v14  ;;  %v526_v63 = vpack.c.bf16 %v330_v62, %v329_v61  ;;  %v424_v4 = vld [vmem:[%s816_s6] ss:$0 sm:$0xff] }
  0x41   :  { %461 = vmatmul.mubr.msk.f32.vlgmr.msra.gmra.mrb[0].mxu0 %vm85_vm1, %v73_v8  ;;  %513 = vmatprep.subr.bf16.mxu1 %v614_v0 }
  0x42   :  { %498 = vmatprep.mubr.msk.f32.mxu0 %vm615_vm0, %v616_v1  ;;  %521 = vmatpush3.bf16.msra.mxu0 %v520_v57  ;;  %v331_v1 = vld [vmem:[%s819_s9 + $0x30] sm:$0xff] }
  0x43   :  { %522 = vmatprep.subr.bf16.mxu0 %v614_v0  ;;  %v529_v3 = vpack.c.bf16 %v332_v2, %v331_v1 }
  0x44   :  { %515 = vmatpush3.bf16.msra.mxu1 %v514_v17 }
  0x45   :  { %516 = vmatprep.subr.bf16.mxu1 %v614_v0 }
  0x46   :  { %524 = vmatpush3.bf16.msra.mxu0 %v523_v60 }
  0x47   :  { %525 = vmatprep.subr.bf16.mxu0 %v614_v0 }
  0x48   :  { %518 = vmatpush3.bf16.msra.mxu1 %v517_v20 }
  0x4a   :  { %527 = vmatpush3.bf16.msra.mxu0 %v526_v63 }
  0x4b   :  { %528 = vmatprep.subr.bf16.mxu0 %v614_v0 }
  0x4e   :  { %530 = vmatpush3.bf16.msra.mxu0 %v529_v3 }
 0x114   :  { %v155_v22 = vpop.f32.mrb[0].mxu0 }
 0x115   :  { %v156_v23 = vadd.f32 %v421_v21, %v155_v22  ;;  %v462_v24 = vpop.f32.mrb[1].mxu0 }
 0x117   :  { %v162_v25 = vsel %vm161_vm2, %v156_v23, 0.0 }
 0x118   :  { %v163_v26 = vrot.slane %v162_v25, 4 }
 0x11a   :  { %v164_v27 = vadd.f32 %v163_v26, %v162_v25  ;;  %v287_v26 = vld [vmem:[%s817_s7] sm:$0x1] }
 0x11c   :  { %v165_v28 = vrot.slane %v164_v27, 2 }
 0x11e   :  { %v166_v29 = vadd.f32 %v165_v28, %v164_v27 }
 0x120   :  { %v167_v30 = vrot.slane %v166_v29, 1 }
 0x122   :  { %v168_v31 = vadd.f32 %v167_v30, %v166_v29  ;;  %v426_v30 = vld [vmem:[#allocation4] ss:$0 sm:$0xff] }
 0x124   :  { %v170_v32 = vmul.f32 0.125, %v168_v31 }
 0x126   :  { %v171_v33 = vsub.f32 %v156_v23, %v170_v32 }
 0x128   :  { %v172_v34 = vmul.f32 %v171_v33, %v171_v33 }
 0x12a   :  { %v173_v35 = vsel %vm161_vm2, %v172_v34, 0.0  ;;  %v427_v34 = vld [vmem:[#allocation6] ss:$0 sm:$0xff] }
 0x12b   :  { %v174_v36 = vrot.slane %v173_v35, 4 }
 0x12d   :  { %v175_v37 = vadd.f32 %v174_v36, %v173_v35 }
 0x12f   :  { %v176_v38 = vrot.slane %v175_v37, 2 }
 0x131   :  { %v177_v39 = vadd.f32 %v176_v38, %v175_v37 }
 0x133   :  { %v178_v40 = vrot.slane %v177_v39, 1 }
 0x135   :  { %v179_v41 = vadd.f32 %v178_v40, %v177_v39 }
 0x137   :  { %v180_v42 = vmul.f32 0.125, %v179_v41 }
 0x139   :  { %v181_v43 = vadd.f32 1e-05, %v180_v42 }
 0x13b   :  { %537 = vrsqrt.f32 %v181_v43 }
 0x145   :  { %v538_v48 = vpop.eup %537 }
 0x146   :  { %v183_v49 = vmul.f32 %v538_v48, %v159_v46 }
 0x148   :  { %v188_v50 = vrot.slane %v183_v49, %v187_v47 }
 0x14a   :  { %v190_v52 = vmul.f32 %v188_v50, %v171_v33 }
 0x14c   :  { %v197_v53 = vadd.f32 %v423_v51, %v190_v52 }
 0x14e   :  { %v198_v54 = vmax.f32 %v197_v53, 0.0 }
 0x150   :  { %480 = vmatmul.mubr.msk.f32.vlgmr.msra.gmra.mrb[0].mxu1 %vm161_vm2, %v198_v54 }
 0x223   :  { %v283_v5 = vpop.f32.mrb[0].mxu1 }
 0x224   :  { %v284_v6 = vadd.f32 %v424_v4, %v283_v5  ;;  %v481_v7 = vpop.f32.mrb[1].mxu1 }
 0x226   :  { %v289_v8 = vsel %vm161_vm2, %v284_v6, 0.0 }
 0x227   :  { %v290_v0 = vrot.slane %v289_v8, 4 }
 0x229   :  { %v291_v9 = vadd.f32 %v290_v0, %v289_v8 }
 0x22b   :  { %v292_v10 = vrot.slane %v291_v9, 2 }
 0x22d   :  { %v293_v11 = vadd.f32 %v292_v10, %v291_v9 }
 0x22f   :  { %v294_v12 = vrot.slane %v293_v11, 1 }
 0x231   :  { %v295_v13 = vadd.f32 %v294_v12, %v293_v11 }
 0x233   :  { %v296_v14 = vmul.f32 0.125, %v295_v13 }
 0x235   :  { %v297_v15 = vsub.f32 %v284_v6, %v296_v14 }
 0x237   :  { %v298_v16 = vmul.f32 %v297_v15, %v297_v15 }
 0x239   :  { %v299_v17 = vsel %vm161_vm2, %v298_v16, 0.0 }
 0x23a   :  { %v300_v18 = vrot.slane %v299_v17, 4 }
 0x23c   :  { %v301_v19 = vadd.f32 %v300_v18, %v299_v17 }
 0x23e   :  { %v302_v20 = vrot.slane %v301_v19, 2 }
 0x240   :  { %v303_v21 = vadd.f32 %v302_v20, %v301_v19 }
 0x242   :  { %v304_v22 = vrot.slane %v303_v21, 1 }
 0x244   :  { %v305_v23 = vadd.f32 %v304_v22, %v303_v21 }
 0x246   :  { %v306_v24 = vmul.f32 0.125, %v305_v23 }
 0x248   :  { %v307_v25 = vadd.f32 1e-05, %v306_v24 }
 0x24a   :  { %539 = vrsqrt.f32 %v307_v25 }
 0x254   :  { %v540_v27 = vpop.eup %539 }
 0x255   :  { %v309_v28 = vmul.f32 %v540_v27, %v287_v26 }
 0x257   :  { %v314_v29 = vrot.slane %v309_v28, %v187_v47 }
 0x259   :  { %v316_v31 = vmul.f32 %v314_v29, %v297_v15 }
 0x25b   :  { %v323_v32 = vadd.f32 %v426_v30, %v316_v31 }
 0x25d   :  { %v324_v33 = vmax.f32 %v323_v32, 0.0 }
 0x25f   :  { %499 = vmatmul.mubr.msk.f32.vlgmr.msra.gmra.mrb[2].mxu0 %vm161_vm2, %v324_v33 }
 0x332   :  { %v409_v35 = vpop.f32.mrb[2].mxu0 }
 0x333   :  { %v410_v36 = vadd.f32 %v427_v34, %v409_v35  ;;  %v500_v37 = vpop.f32.mrb[3].mxu0 }
 0x335   :  { %414 = vst.msk [vmem:[%s821_s11] sm:$0xff] %vm413_vm3, %v410_v36 }
 0x336   :  { %419 = vsyncpa [#allocation3], 1 }
 0x337   :  { %420 = vsyncpa [#allocation5], 1 }

</bundles_post_ra>
